<compile_context>
chip_gen: v6e
topology: v6e:2x2x1
jax: 0.10.0
libtpu: 0.0.40
codegen_flags: <defaults>
</compile_context>

<pallas_src>
import jax
import jax.numpy as jnp
from jax.experimental import pallas as pl
from jax.experimental.pallas import tpu as pltpu


def dense_kernel(y_ref, a_ref, w_ref, b_ref, out_ref):
    # y_ref: (T, tN, H)   a_ref: (tN, T)   w_ref: (H, Cp)   b_ref: (1, Cp)
    T = y_ref.shape[0]

    # a-weighted reduction of Y over the iteration axis, one t-slice at a time
    # (keeps the live set to a single (tN, H) slice + accumulator; no (T,tN,H)
    # f32 temporary). T is small and static -> unrolled at trace time.
    acc = a_ref[:, 0:1].astype(jnp.float32) * y_ref[0].astype(jnp.float32)
    for t in range(1, T):
        acc = acc + a_ref[:, t:t + 1].astype(jnp.float32) * \
            y_ref[t].astype(jnp.float32)                      # (tN, H)

    a_sum = jnp.sum(a_ref[...].astype(jnp.float32),
                    axis=1, keepdims=True)                    # (tN, 1)

    out = jnp.dot(acc, w_ref[...].astype(jnp.float32),
                  preferred_element_type=jnp.float32)         # (tN, Cp)
    out = out + a_sum * b_ref[...].astype(jnp.float32)        # bias * sum_t a_t
    out_ref[...] = out.astype(out_ref.dtype)


def _vmem_capacity_bytes():
    """Physical VMEM per TensorCore (generation-aware), with a safe fallback."""
    try:
        return int(pltpu.get_tpu_info().vmem_capacity_bytes)
    except Exception:
        return 64 * 1024 * 1024  # conservative: v7x per-TC VMEM


def _pick_node_tile(n_nodes, n_iters, n_hids, c_pad, budget_bytes):
    """Largest node tile whose full working set (double-buffered inputs/outputs
    + resident W/b + compute temporaries) fits the budget, preferring >= 2 grid
    steps so v7x's two TensorCores both get work."""
    itemsize = 4  # f32 streaming

    def fits(t):
        y_bytes = 2 * n_iters * t * n_hids * itemsize      # Y tile, dbl-buffered
        a_bytes = 2 * t * 128 * itemsize                    # (tN, T) lane-padded
        w_bytes = 2 * n_hids * c_pad * itemsize             # weight (resident)
        b_bytes = 2 * 8 * c_pad * itemsize                  # bias (sublane pad)
        o_bytes = 2 * t * c_pad * itemsize                  # output tile
        tmp = t * n_hids * 4 + t * c_pad * 4                # acc + matmul result
        return y_bytes + a_bytes + w_bytes + b_bytes + o_bytes + tmp <= budget_bytes

    if n_nodes <= 8:
        return n_nodes                                       # full (legal) tile

    cands = [c for c in (2048, 1024, 512, 256, 128, 64, 32, 16, 8) if c <= n_nodes]

    # Prefer the largest fitting tile that still leaves >= 2 grid steps.
    for c in cands:
        if fits(c) and pl.cdiv(n_nodes, c) >= 2:
            return c
    # Otherwise the largest tile that fits at all.
    for c in cands:
        if fits(c):
            return c
    return 8                                                 # smallest legal tile


def prepare_dense_params(W, b):
    """Hoisted once per set of weights: transpose + zero-pad the class dim to a
    multiple of 128 so kernel stores are lane-dense (unmasked vst)."""
    C, H = W.shape
    C_pad = ((C + 127) // 128) * 128
    W_pad = jnp.zeros((H, C_pad), W.dtype).at[:, :C].set(W.T)
    b_pad = jnp.zeros((1, C_pad), b.dtype).at[:, :C].set(b[None, :])
    return W_pad, b_pad, C


def dense_forward(Y, a, W_pad, b_pad, n_class):
    """Eval-mode forward of the PyTorch `dense` module.

    Y:     (T, N, H)   RNN outputs
    a:     (T, N, 1)   attention rates
    W_pad: (H, C_pad)  padded/transposed nn.Linear weight (prepare_dense_params)
    b_pad: (1, C_pad)  padded bias
    returns: (N, n_class)
    """
    T, N, H = Y.shape
    C_pad = W_pad.shape[1]

    # Lane-dense attention: (T, N, 1) -> (N, T). Tiny HBM pass (T*N*4 bytes),
    # saves a factor-of-T of lane padding per node tile inside the kernel.
    a_nt = jnp.transpose(a[..., 0], (1, 0))

    vmem_cap = _vmem_capacity_bytes()
    budget = (vmem_cap * 3) // 8          # working-set target
    vmem_limit = vmem_cap // 2            # scoped limit (above v5e's 16 MiB default)

    tN = _pick_node_tile(N, T, H, C_pad, budget)
    grid = (pl.cdiv(N, tN),)              # ragged last tile handled by Pallas

    out = pl.pallas_call(
        dense_kernel,
        out_shape=jax.ShapeDtypeStruct((N, C_pad), Y.dtype),
        grid_spec=pltpu.PrefetchScalarGridSpec(
            num_scalar_prefetch=0,
            grid=grid,
            in_specs=[
                pl.BlockSpec((T, tN, H), lambda i: (0, i, 0)),  # Y node tile
                pl.BlockSpec((tN, T), lambda i: (i, 0)),        # a (lane-dense)
                pl.BlockSpec((H, C_pad), lambda i: (0, 0)),     # weight (resident)
                pl.BlockSpec((1, C_pad), lambda i: (0, 0)),     # bias (resident)
            ],
            out_specs=pl.BlockSpec((tN, C_pad), lambda i: (i, 0)),
        ),
        compiler_params=pltpu.CompilerParams(
            dimension_semantics=("parallel",),   # independent node tiles
            vmem_limit_bytes=vmem_limit,
        ),
    )(Y, a_nt, W_pad, b_pad)

    return out[:, :n_class]


if __name__ == "__main__":
    n_iters, n_nodes, n_hids, n_class = 8, 16, 32, 8

    key = jax.random.PRNGKey(0)
    k_y, k_a, k_w, k_b = jax.random.split(key, 4)

    Y = jax.random.normal(k_y, (n_iters, n_nodes, n_hids), dtype=jnp.float32)
    a = jax.random.uniform(k_a, (n_iters, n_nodes, 1), dtype=jnp.float32)

    # nn.Linear(n_hids, n_class): weight (n_class, n_hids), bias (n_class,)
    bound = 1.0 / jnp.sqrt(n_hids)
    W = jax.random.uniform(k_w, (n_class, n_hids), dtype=jnp.float32,
                           minval=-bound, maxval=bound)
    b = jax.random.uniform(k_b, (n_class,), dtype=jnp.float32,
                           minval=-bound, maxval=bound)

    # Padded params prepared once (hoisted out of the forward call).
    W_pad, b_pad, C = prepare_dense_params(W, b)

    out = dense_forward(Y, a, W_pad, b_pad, C)
    out = jax.block_until_ready(out)

    # pure-JAX reference check (eval mode)
    ref = jnp.sum((jnp.einsum('tnh,ch->tnc', Y, W) + b) * a, axis=0)
    assert out.shape == (n_nodes, n_class)
    assert jnp.allclose(out, ref, atol=1e-4, rtol=1e-4)

    print("KERNEL_OK")
</pallas_src>

<mosaic_0001>
module attributes {stable_mosaic.version = 11 : i64} {
  func.func @dense_kernel(%arg0: i32, %arg1: memref<8x8x32xf32, #tpu.memory_space<vmem>>, %arg2: memref<8x8xf32, #tpu.memory_space<vmem>>, %arg3: memref<32x128xf32, #tpu.memory_space<vmem>>, %arg4: memref<1x128xf32, #tpu.memory_space<vmem>>, %arg5: memref<8x128xf32, #tpu.memory_space<vmem>>) attributes {dimension_semantics = [#tpu.dimension_semantics<parallel>], iteration_bounds = array<i64: 2>, scalar_prefetch = 0 : i64, scratch_operands = 0 : i64, tpu.core_type = #tpu.core_type<tc>, window_params = [{transform_indices = @transform_0, window_bounds = array<i64: 8, 8, 32>}, {transform_indices = @transform_1, window_bounds = array<i64: 8, 8>}, {pipeline_mode = #tpu.pipeline_mode<synchronous>, transform_indices = @transform_2, window_bounds = array<i64: 32, 128>}, {pipeline_mode = #tpu.pipeline_mode<synchronous>, transform_indices = @transform_3, window_bounds = array<i64: 1, 128>}, {transform_indices = @transform_4, window_bounds = array<i64: 8, 128>}]} {
    %c0 = arith.constant 0 : index
    %c0_0 = arith.constant 0 : index
    %0 = vector.load %arg2[%c0, %c0_0] : memref<8x8xf32, #tpu.memory_space<vmem>>, vector<8x1xf32>
    %c0_1 = arith.constant 0 : index
    %c0_2 = arith.constant 0 : index
    %c0_3 = arith.constant 0 : index
    %1 = vector.load %arg1[%c0_1, %c0_2, %c0_3] : memref<8x8x32xf32, #tpu.memory_space<vmem>>, vector<1x8x32xf32>
    %2 = vector.shape_cast %1 : vector<1x8x32xf32> to vector<8x32xf32>
    %3 = vector.broadcast %0 : vector<8x1xf32> to vector<8x32xf32>
    %4 = arith.mulf %3, %2 : vector<8x32xf32>
    %c0_4 = arith.constant 0 : index
    %c1 = arith.constant 1 : index
    %5 = vector.load %arg2[%c0_4, %c1] : memref<8x8xf32, #tpu.memory_space<vmem>>, vector<8x1xf32>
    %c1_5 = arith.constant 1 : index
    %c0_6 = arith.constant 0 : index
    %c0_7 = arith.constant 0 : index
    %6 = vector.load %arg1[%c1_5, %c0_6, %c0_7] : memref<8x8x32xf32, #tpu.memory_space<vmem>>, vector<1x8x32xf32>
    %7 = vector.shape_cast %6 : vector<1x8x32xf32> to vector<8x32xf32>
    %8 = vector.broadcast %5 : vector<8x1xf32> to vector<8x32xf32>
    %9 = arith.mulf %8, %7 : vector<8x32xf32>
    %10 = arith.addf %4, %9 : vector<8x32xf32>
    %c0_8 = arith.constant 0 : index
    %c2 = arith.constant 2 : index
    %11 = vector.load %arg2[%c0_8, %c2] : memref<8x8xf32, #tpu.memory_space<vmem>>, vector<8x1xf32>
    %c2_9 = arith.constant 2 : index
    %c0_10 = arith.constant 0 : index
    %c0_11 = arith.constant 0 : index
    %12 = vector.load %arg1[%c2_9, %c0_10, %c0_11] : memref<8x8x32xf32, #tpu.memory_space<vmem>>, vector<1x8x32xf32>
    %13 = vector.shape_cast %12 : vector<1x8x32xf32> to vector<8x32xf32>
    %14 = vector.broadcast %11 : vector<8x1xf32> to vector<8x32xf32>
    %15 = arith.mulf %14, %13 : vector<8x32xf32>
    %16 = arith.addf %10, %15 : vector<8x32xf32>
    %c0_12 = arith.constant 0 : index
    %c3 = arith.constant 3 : index
    %17 = vector.load %arg2[%c0_12, %c3] : memref<8x8xf32, #tpu.memory_space<vmem>>, vector<8x1xf32>
    %c3_13 = arith.constant 3 : index
    %c0_14 = arith.constant 0 : index
    %c0_15 = arith.constant 0 : index
    %18 = vector.load %arg1[%c3_13, %c0_14, %c0_15] : memref<8x8x32xf32, #tpu.memory_space<vmem>>, vector<1x8x32xf32>
    %19 = vector.shape_cast %18 : vector<1x8x32xf32> to vector<8x32xf32>
    %20 = vector.broadcast %17 : vector<8x1xf32> to vector<8x32xf32>
    %21 = arith.mulf %20, %19 : vector<8x32xf32>
    %22 = arith.addf %16, %21 : vector<8x32xf32>
    %c0_16 = arith.constant 0 : index
    %c4 = arith.constant 4 : index
    %23 = vector.load %arg2[%c0_16, %c4] : memref<8x8xf32, #tpu.memory_space<vmem>>, vector<8x1xf32>
    %c4_17 = arith.constant 4 : index
    %c0_18 = arith.constant 0 : index
    %c0_19 = arith.constant 0 : index
    %24 = vector.load %arg1[%c4_17, %c0_18, %c0_19] : memref<8x8x32xf32, #tpu.memory_space<vmem>>, vector<1x8x32xf32>
    %25 = vector.shape_cast %24 : vector<1x8x32xf32> to vector<8x32xf32>
    %26 = vector.broadcast %23 : vector<8x1xf32> to vector<8x32xf32>
    %27 = arith.mulf %26, %25 : vector<8x32xf32>
    %28 = arith.addf %22, %27 : vector<8x32xf32>
    %c0_20 = arith.constant 0 : index
    %c5 = arith.constant 5 : index
    %29 = vector.load %arg2[%c0_20, %c5] : memref<8x8xf32, #tpu.memory_space<vmem>>, vector<8x1xf32>
    %c5_21 = arith.constant 5 : index
    %c0_22 = arith.constant 0 : index
    %c0_23 = arith.constant 0 : index
    %30 = vector.load %arg1[%c5_21, %c0_22, %c0_23] : memref<8x8x32xf32, #tpu.memory_space<vmem>>, vector<1x8x32xf32>
    %31 = vector.shape_cast %30 : vector<1x8x32xf32> to vector<8x32xf32>
    %32 = vector.broadcast %29 : vector<8x1xf32> to vector<8x32xf32>
    %33 = arith.mulf %32, %31 : vector<8x32xf32>
    %34 = arith.addf %28, %33 : vector<8x32xf32>
    %c0_24 = arith.constant 0 : index
    %c6 = arith.constant 6 : index
    %35 = vector.load %arg2[%c0_24, %c6] : memref<8x8xf32, #tpu.memory_space<vmem>>, vector<8x1xf32>
    %c6_25 = arith.constant 6 : index
    %c0_26 = arith.constant 0 : index
    %c0_27 = arith.constant 0 : index
    %36 = vector.load %arg1[%c6_25, %c0_26, %c0_27] : memref<8x8x32xf32, #tpu.memory_space<vmem>>, vector<1x8x32xf32>
    %37 = vector.shape_cast %36 : vector<1x8x32xf32> to vector<8x32xf32>
    %38 = vector.broadcast %35 : vector<8x1xf32> to vector<8x32xf32>
    %39 = arith.mulf %38, %37 : vector<8x32xf32>
    %40 = arith.addf %34, %39 : vector<8x32xf32>
    %c0_28 = arith.constant 0 : index
    %c7 = arith.constant 7 : index
    %41 = vector.load %arg2[%c0_28, %c7] : memref<8x8xf32, #tpu.memory_space<vmem>>, vector<8x1xf32>
    %c7_29 = arith.constant 7 : index
    %c0_30 = arith.constant 0 : index
    %c0_31 = arith.constant 0 : index
    %42 = vector.load %arg1[%c7_29, %c0_30, %c0_31] : memref<8x8x32xf32, #tpu.memory_space<vmem>>, vector<1x8x32xf32>
    %43 = vector.shape_cast %42 : vector<1x8x32xf32> to vector<8x32xf32>
    %44 = vector.broadcast %41 : vector<8x1xf32> to vector<8x32xf32>
    %45 = arith.mulf %44, %43 : vector<8x32xf32>
    %46 = arith.addf %40, %45 : vector<8x32xf32>
    %c0_32 = arith.constant 0 : index
    %c0_33 = arith.constant 0 : index
    %47 = vector.load %arg2[%c0_32, %c0_33] : memref<8x8xf32, #tpu.memory_space<vmem>>, vector<8x8xf32>
    %cst = arith.constant dense<0.000000e+00> : vector<8xf32>
    %48 = vector.multi_reduction <add>, %47, %cst [1] : vector<8x8xf32> to vector<8xf32>
    %49 = vector.shape_cast %48 : vector<8xf32> to vector<8x1xf32>
    %c0_34 = arith.constant 0 : index
    %c0_35 = arith.constant 0 : index
    %50 = vector.load %arg3[%c0_34, %c0_35] : memref<32x128xf32, #tpu.memory_space<vmem>>, vector<32x128xf32>
    %cst_36 = arith.constant dense<0.000000e+00> : vector<8x128xf32>
    %51 = tpu.matmul %46, %50, %cst_36 {dimension_numbers = #tpu.dot_dimension_numbers<[1], [0], [0], [1], [0, 0, 1, 1], [], []>} : vector<8x32xf32>, vector<32x128xf32>, vector<8x128xf32> -> vector<8x128xf32>
    %c0_37 = arith.constant 0 : index
    %c0_38 = arith.constant 0 : index
    %52 = vector.load %arg4[%c0_37, %c0_38] : memref<1x128xf32, #tpu.memory_space<vmem>>, vector<1x128xf32>
    %53 = vector.broadcast %49 : vector<8x1xf32> to vector<8x128xf32>
    %54 = vector.broadcast %52 : vector<1x128xf32> to vector<8x128xf32>
    %55 = arith.mulf %53, %54 : vector<8x128xf32>
    %56 = arith.addf %51, %55 : vector<8x128xf32>
    %c0_39 = arith.constant 0 : index
    %c0_40 = arith.constant 0 : index
    %57 = vector.load %arg5[%c0_39, %c0_40] : memref<8x128xf32, #tpu.memory_space<vmem>>, vector<8x128xf32>
    tpu.vector_store %arg5[%c0_39, %c0_40], %56 {strides = array<i32>} : memref<8x128xf32, #tpu.memory_space<vmem>>, vector<8x128xf32>,
    return
  }
  func.func @transform_0(%arg0: i32) -> (i32, i32, i32) {
    %c0_i32 = arith.constant 0 : i32
    %c0_i32_0 = arith.constant 0 : i32
    %c0_i32_1 = arith.constant 0 : i32
    return %c0_i32, %arg0, %c0_i32_0 : i32, i32, i32
  }
  func.func @transform_1(%arg0: i32) -> (i32, i32) {
    %c0_i32 = arith.constant 0 : i32
    %c0_i32_0 = arith.constant 0 : i32
    return %arg0, %c0_i32 : i32, i32
  }
  func.func @transform_2(%arg0: i32) -> (i32, i32) {
    %c0_i32 = arith.constant 0 : i32
    %c0_i32_0 = arith.constant 0 : i32
    %c0_i32_1 = arith.constant 0 : i32
    return %c0_i32, %c0_i32_0 : i32, i32
  }
  func.func @transform_3(%arg0: i32) -> (i32, i32) {
    %c0_i32 = arith.constant 0 : i32
    %c0_i32_0 = arith.constant 0 : i32
    %c0_i32_1 = arith.constant 0 : i32
    return %c0_i32, %c0_i32_0 : i32, i32
  }
  func.func @transform_4(%arg0: i32) -> (i32, i32) {
    %c0_i32 = arith.constant 0 : i32
    %c0_i32_0 = arith.constant 0 : i32
    return %arg0, %c0_i32 : i32, i32
  }
}

</mosaic_0001>

<bundles_post_ra>
// kernel: tpu_custom_call.1
= control target key start
LH: loop header
LB: loop body
LE: loop exit
PB: predicated region body
PF: predicated region fallthrough
CT: control target
= control target key end

     0   :  { %9 = vsyncpa [#allocation3], 0  ;;  %s991_s0 = inlined_call_operand.hbm [shape: f32[8,16,32], index: 0, kind: input, shape index: {}]   ;;  %s992_s1 = inlined_call_operand.vmem [shape: f32[16,8], index: 1, kind: input, shape index: {}]   ;;  %s993_s2 = inlined_call_operand.hbm [shape: f32[32,128], index: 2, kind: input, shape index: {}]   ;;  %s994_s3 = inlined_call_operand.vmem [shape: f32[1,128], index: 3, kind: input, shape index: {}]   ;;  %s995_s4 = inlined_call_operand.hbm [shape: f32[16,128], index: 4, kind: output, shape index: {}]  }
   0x1   :  { %11 = vsyncpa [#allocation3 + $0x1], 0 }
   0x2   :  { %12 = vsyncpa [#allocation6], 0 }
   0x3   :  { %13 = vsyncpa [#allocation4], 0 }
   0x4   :  { %15 = vsyncpa [#allocation4 + $0x1], 0  ;;  %s792_s15 = smov 0   ;;  %s794_s16 = smov 0  }
   0x5   :  { %s796_s17 = smov 0   ;;  %s798_s18 = smov 0  }
   0x6 LB: > { %s813_s19 = sadd.s32 4294967295, %s749_s18   ;;  %s508_s20 = sadd.s32 4294967294, %s749_s18   ;;  %s749_s18 = sphi %s798_s18, %s1017_s18   ;;  %s745_s17 = sphi %s796_s17, %s1016_s17   ;;  %s741_s16 = sphi %s794_s16, %s1015_s16   ;;  %s737_s15 = sphi %s792_s15, %s1014_s15  }
   0x7   : > { %s817_s21 = sadd.s32 1, %s749_s18   ;;  %s28_s22 = sadd.s32 1, %s745_s17 }
   0x8   : > { %s25_s23 = ssub.s32 %s749_s18, %s817_s21  ;;  %p35_p0 = scmp.ne.s32.totalorder %s745_s17, %s741_s16 }
   0x9   : > { %p26_p1 = scmp.eq.s32.totalorder %s25_s23, 0  ;;  %p36_p2 = scmp.eq.s32.totalorder %s749_s18, 0 }
   0xa   : > { %p41_p3 = scmp.ne.s32.totalorder %s741_s16, %s737_s15  ;;  %p999_p4 = scmp.eq.s32.totalorder %s813_s19, 0 }
   0xb   : > { %s829_s24 = scalar_select %p26_p1, %s745_s17, %s28_s22  }
   0xc   : > { %p831_p5 = por %p36_p2, %p35_p0  ;;  %p837_p6 = por %p999_p4, %p41_p3 }
   0xd   : > { %p133_p7 = scmp.eq.s32.totalorder %s813_s19, 1  ;;  %p139_p8 = scmp.eq.s32.totalorder %s508_s20, 1 }
   0xe   : > { %s1001_s26 = scalar_select %p837_p6, 1, 0 }
   0xf   : > { %p509_p9 = scmp.ge.s32.totalorder %s749_s18, 1  ;;  %p146_p10 = scmp.lt.s32.totalorder %s749_s18, 3 }
  0x10   : > { %p844_p11 = por %p133_p7, %p35_p0  ;;  %p848_p12 = por %p139_p8, %p41_p3 }
  0x11   : > { %p852_p13 = pnand %p509_p9, %p146_p10  ;;  %s751_s30 = smov [#allocation5]  }
  0x12   : > { %s1002_s27 = scalar_select %p844_p11, 1, 0 }
  0x13   : > { %s1003_s28 = scalar_select %p848_p12, 1, 0 }
  0x14   : > { %s1004_s29 = scalar_select %p852_p13, 1, 0 }
  0x15   : > { %p556_p1 = pneg %p852_p13  ;;  %s158_s5 = sshll.u32 %s751_s30, 4  ;;  %s159_s5 = int_to_ptr.vmem [resolvable:$true] %s158_s5 }
  0x16   : > { %p569_p3 = scmp.lt.s32.totalorder %s749_s18, 2  ;;  %s175_s7 = sand.u32 1, %s745_s17  }
  0x17   : > { %p860_p2 = pnand %p556_p1, %p999_p4  ;;  %s638_s8 = scalar_lea.vmem %s159_s5, 512 }
  0x18   : > { %p639_p8 = scmp.ne.s32.totalorder %s159_s5, %s638_s8  ;;  %p646_p12 = scmp.lt.s32.totalorder %s159_s5, %s159_s5 }
  0x19   : > { %p629_p7 = pneg %p860_p2  ;;  %p647_p11 = scmp.lt.s32.totalorder %s638_s8, %s638_s8 }
  0x1b   : > { %p641_p9 = pnand %p639_p8, %p629_p7  ;;  %p648_p6 = por %p647_p11, %p646_p12 }
  0x1d   : > { %p642_p10 = pneg %p641_p9 }
  0x1f   : > { %p649_p13 = pnand %p648_p6, %p642_p10 }
  0x21   : > { %652 = shalt.err (!%p649_p13)
}
  0x22   : > { %s752_s9 = smov 128   ;;  %s753_s10 = smov 8  }
  0x23   : > { %559 = dma.hbm_to_vmem [thread:$0]  (!%p860_p2), %s993_s2, 512, %s159_s5, [#allocation6], %s752_s9, %s752_s9, %s753_s10  }
  0x24   : > { %p881_p1 = pnand %p569_p3, %p831_p5  ;;  %s512_s14 = sshll.u32 %s175_s7, 6 }
  0x25   : > { %s513_s20 = sshll.u32 %s749_s18, 7  ;;  %s179_s6 = scalar_lea.vmem [#allocation2], %s512_s14 }
  0x26   : > { %s889_s30 = scalar_lea.hbm %s991_s0, %s513_s20  ;;  %s185_s8 = sshll.u32 %s179_s6, 4  ;;  %s891_s8 = int_to_ptr.vmem [resolvable:$true] %s185_s8 }
  0x27   : > { %s893_s25 = scalar_lea.sflag [#allocation3], %s175_s7  ;;  %s653_s5 = scalar_lea.hbm %s889_s30, 1024 }
  0x28   : > { %p654_p5 = scmp.ne.s32.totalorder %s889_s30, %s653_s5  ;;  %p655_p6 = pneg %p881_p1 }
  0x29   : > { %s658_s20 = scalar_lea.hbm %s991_s0, 2048  ;;  %p659_p13 = scmp.lt.s32.totalorder %s889_s30, %s991_s0 }
  0x2a   : > { %p656_p11 = pnand %p655_p6, %p654_p5  ;;  %p660_p2 = scmp.lt.s32.totalorder %s658_s20, %s653_s5 }
  0x2c   : > { %p657_p12 = pneg %p656_p11  ;;  %p661_p3 = por %p660_p2, %p659_p13 }
  0x2e   : > { %p662_p7 = pnand %p661_p3, %p657_p12 }
  0x30   : > { %665 = shalt.err (!%p662_p7)
}
  0x31   : > { %s666_s7 = scalar_lea.vmem %s891_s8, 1024  ;;  %s754_s14 = smov [#allocation2]  }
  0x32   : > { %p667_p8 = scmp.ne.s32.totalorder %s891_s8, %s666_s7  ;;  %s671_s6 = sshll.u32 %s754_s14, 4  ;;  %s672_s6 = int_to_ptr.vmem [resolvable:$false] %s671_s6 }
  0x33   : > { %s673_s11 = scalar_lea.vmem %s672_s6, 2048  ;;  %p674_p5 = scmp.lt.s32.totalorder %s891_s8, %s672_s6 }
  0x34   : > { %p669_p9 = pnand %p667_p8, %p655_p6  ;;  %p675_p11 = scmp.lt.s32.totalorder %s673_s11, %s666_s7 }
  0x36   : > { %p670_p10 = pneg %p669_p9  ;;  %p676_p0 = por %p675_p11, %p674_p5 }
  0x38   : > { %p677_p4 = pnand %p676_p0, %p670_p10 }
  0x3a   : > { %680 = shalt.err (!%p677_p4)
}
  0x3b   : > { %s755_s5 = smov 256   ;;  %p1007_p6 = scmp.ne.s32.totalorder %s1004_s29, 0 }
  0x3c   : > { %563 = dma.hbm_to_vmem [thread:$0]  (!%p881_p1), %s889_s30, 1024, %s891_s8, %s893_s25, %s755_s5, %s752_s9, %s753_s10  }
  0x3d   : > { %204 = sbr.rel (%p1007_p6) target bundleno = 433 (0x1b1), region = 36  ;;  %s919_s12 = sand.u32 (!%p1007_p6), 1, %s741_s16  }
  0x3e   : > { %s515_s20 = sshll.u32 (!%p1007_p6), %s919_s12, 6  ;;  %s207_s22 = scalar_lea.sflag (!%p1007_p6), [#allocation3], %s919_s12 }
  0x3f   : > { %s923_s23 = scalar_lea.vmem (!%p1007_p6), [#allocation2], %s515_s20  ;;  %p1008_p4 = scmp.ne.s32.totalorder (!%p1007_p6), %s1001_s26, 0 }
  0x42   : > { %724 = dma.done.wait (%p1008_p4), %s207_s22, 1024  }
  0x43   : > { %726 = vsyncadd (%p1008_p4), %s207_s22, 4294966272  ;;  %p1009_p0 = scmp.eq.s32.totalorder %s813_s19, 0 }
  0x45   : > { %728 = dma.done.wait (%p1009_p0), [#allocation6], 512   ;;  %p1010_p1 = pmov %p1009_p0 }
  0x46   : > { %p243_p12 = scmp.lt.s32.totalorder %s813_s19, 1  ;;  %v756_v0 = vmov 2   ;;  %v757_v1 = vmov 0   ;;  %v758_v3 = vmov 3   ;;  %v759_v4 = vmov 1   ;;  %v318_v8 = vld [vmem:[#allocation5 + $0x18] sm:$0xff] }
  0x47   : > { %730 = vsyncadd (%p1010_p1), [#allocation6], 4294966784  ;;  %620 = vset.pattern.permute.xlu1 %v756_v0  ;;  %618 = vset.pattern.permute.xlu0 %v757_v1  ;;  %v760_v5 = vmov 4   ;;  %v761_v6 = vmov 5   ;;  %v762_v7 = vmov 0.0   ;;  %v317_v9 = vld [vmem:[#allocation5 + $0x10] sm:$0xff] }
  0x48   : > { %s244_s29 = scalar_select %p243_p12, %s813_s19, 1  ;;  %537 = vmatprep.subr.mxu0 %v762_v7  ;;  %v763_v10 = vmov 6   ;;  %v316_v11 = vld [vmem:[#allocation5 + $0x8] sm:$0xff]  ;;  %v764_v12 = vmov 7   ;;  %v315_v13 = vld [vmem:[#allocation5] sm:$0xff]  ;;  %vm765_vm0 = vmmov 0  }
  0x49   : > { %538 = vmatpush3.msra.mxu0 %v318_v8  ;;  %545 = vmatprep.mubr.msk.f32.mxu0 %vm765_vm0, %v762_v7  ;;  %vm311_vm1 = vcmask 64512   ;;  %v248_v17 = vld [vmem:[%s923_s23] sm:$0xff]  ;;  %v519_v18 = vld [vmem:[%s923_s23 + $0x8] sm:$0xff]  ;;  %v520_v19 = vld [vmem:[%s923_s23 + $0x10] sm:$0xff]  ;;  %vm327_vm2 = vcmask 261120   ;;  %s517_s30 = sshll.u32 %s919_s12, 3 }
  0x4a   : > { %s518_s9 = sshll.u32 %s244_s29, 3  ;;  %539 = vmatprep.subr.mxu0 %v762_v7  ;;  %v521_v24 = vld [vmem:[%s923_s23 + $0x18] sm:$0xff]  ;;  %v522_v27 = vld [vmem:[%s923_s23 + $0x20] sm:$0xff]  ;;  %v523_v31 = vld [vmem:[%s923_s23 + $0x28] sm:$0xff]  ;;  %s529_s7 = sshll.u32 %s813_s19, 7 }
  0x4b   : > { %s246_s26 = scalar_lea.vmem %s992_s1, %s518_s9  ;;  %540 = vmatpush3.msra.mxu0 %v317_v9  ;;  %v524_v37 = vld [vmem:[%s923_s23 + $0x30] sm:$0xff]  ;;  %v525_v41 = vld [vmem:[%s923_s23 + $0x38] sm:$0xff]  ;;  %v526_v46 = vld [vmem:[%s994_s3] ss:$0 sm:$0xff]  ;;  %s242_s14 = scalar_lea.vmem [#allocation7], %s517_s30 }
  0x4c   : > { %v247_v2 = vld [vmem:[%s246_s26] sm:$0xff]  ;;  %541 = vmatprep.subr.mxu0 %v762_v7  ;;  %s416_s6 = sshll.u32 %s242_s14, 4  ;;  %s954_s20 = scalar_lea.hbm %s995_s4, %s529_s7  ;;  %s417_s6 = int_to_ptr.vmem [resolvable:$true] %s416_s6 }
  0x4d   : > { %266 = vperm.xlu1 %620, %v247_v2   ;;  %251 = vperm.xlu0 %618, %v247_v2   ;;  %v312_v14 = vsel %vm311_vm1, %v247_v2, 0.0  ;;  %s403_s22 = scalar_lea.sflag [#allocation4], %s919_s12  ;;  %s681_s23 = scalar_lea.vmem %s417_s6, 128 }
  0x4e   : > { %542 = vmatpush3.msra.mxu0 %v316_v11  ;;  %p682_p13 = scmp.ne.s32.totalorder %s417_s6, %s681_s23  ;;  %p1011_p2 = scmp.ne.s32.totalorder %s1002_s27, 0 }
  0x4f   : > { %543 = vmatprep.subr.mxu0 %v762_v7  ;;  %s766_s29 = smov [#allocation7]  }
  0x50   : > { %544 = vmatpush3.msra.mxu0 %v315_v13  ;;  %p683_p3 = pnand %p682_p13, %p1011_p2  ;;  %s685_s19 = sshll.u32 %s766_s29, 4  ;;  %s686_s19 = int_to_ptr.vmem [resolvable:$false] %s685_s19 }
  0x51   : > { %621 = vset.pattern.permute.xlu1 %v758_v3  ;;  %619 = vset.pattern.permute.xlu0 %v759_v4  ;;  %s687_s9 = scalar_lea.vmem %s686_s19, 256  ;;  %p688_p8 = scmp.lt.s32.totalorder %s417_s6, %s686_s19 }
  0x52   : > { %274 = vperm.xlu1 %621, %v247_v2   ;;  %258 = vperm.xlu0 %619, %v247_v2   ;;  %p684_p7 = pneg %p683_p3  ;;  %p689_p9 = scmp.lt.s32.totalorder %s687_s9, %s681_s23 }
  0x54   : > { %p690_p10 = por %p689_p9, %p688_p8 }
  0x56   : > { %622 = vset.pattern.permute.xlu1 %v760_v5  ;;  %623 = vset.pattern.permute.xlu0 %v761_v6  ;;  %p691_p5 = pnand %p690_p10, %p684_p7 }
  0x57   : > { %282 = vperm.xlu1 %622, %v247_v2   ;;  %290 = vperm.xlu0 %623, %v247_v2  }
  0x5b   : > { %624 = vset.pattern.permute.xlu1 %v763_v10  ;;  %626 = vset.pattern.permute.xlu0 %v764_v12 }
  0x5c   : > { %298 = vperm.xlu1 %624, %v247_v2  }
  0x60   : > { %625 = vset.pattern.permute.xlu1 %v764_v12 }
  0x61   : > { %306 = vperm.xlu1 %625, %v247_v2  }
  0x76   : > { %313 = vadd.xlane.f32.xlu0 %v312_v14 }
  0xc8   : > { %v267_v15 = vpop.permute.xlu1 %266  ;;  %v252_v16 = vpop.permute.xlu0 %251 }
  0xc9   : > { %v254_v22 = vmul.f32 %v252_v16, %v248_v17  ;;  %v269_v25 = vmul.f32 %v520_v19, %v267_v15 }
  0xcd   : > { %v275_v20 = vpop.permute.xlu1 %274  ;;  %v259_v21 = vpop.permute.xlu0 %258 }
  0xce   : > { %v261_v23 = vmul.f32 %v519_v18, %v259_v21  ;;  %v277_v28 = vmul.f32 %v521_v24, %v275_v20 }
  0xd0   : > { %v262_v26 = vadd.f32 %v261_v23, %v254_v22 }
  0xd2   : > { %v270_v29 = vadd.f32 %v269_v25, %v262_v26  ;;  %v283_v30 = vpop.permute.xlu1 %282  ;;  %v291_v32 = vpop.permute.xlu0 %290 }
  0xd3   : > { %v285_v33 = vmul.f32 %v522_v27, %v283_v30  ;;  %v293_v35 = vmul.f32 %v523_v31, %v291_v32 }
  0xd4   : > { %v278_v34 = vadd.f32 %v277_v28, %v270_v29 }
  0xd6   : > { %v286_v36 = vadd.f32 %v285_v33, %v278_v34 }
  0xd7   : > { %v299_v38 = vpop.permute.xlu1 %298 }
  0xd8   : > { %v294_v39 = vadd.f32 %v293_v35, %v286_v36  ;;  %v301_v40 = vmul.f32 %v524_v37, %v299_v38 }
  0xda   : > { %v302_v43 = vadd.f32 %v301_v40, %v294_v39 }
  0xdc   : > { %v307_v42 = vpop.permute.xlu1 %306 }
  0xdd   : > { %v309_v44 = vmul.f32 %v525_v41, %v307_v42 }
  0xdf   : > { %v310_v45 = vadd.f32 %v309_v44, %v302_v43 }
  0xe1   : > { %546 = vmatmul.mubr.msk.f32.vlgmr.msra.gmra.mxu0 %vm327_vm2, %v310_v45 }
  0xff   : > { %v314_v47 = vpop.xlane.xlu0 %313 }
 0x100   : > { %v326_v48 = vmul.f32 %v526_v46, %v314_v47 }
 0x1a1   : > { %v397_v49 = vpop.f32.mrf.mxu0 }
 0x1a2   : > { %v398_v50 = vadd.f32 %v397_v49, %v326_v48 }
 0x1a3   : > { %v547_v51 = vpop.f32.mrf.mxu0 }
 0x1a4   : > { %401 = vst [vmem:[%s242_s14] sm:$0xff] %v398_v50 }
 0x1a5   : > { %694 = shalt.err (!%p691_p5)
}
 0x1a6   : > { %s695_s10 = scalar_lea.hbm %s954_s20, 128  ;;  %s699_s26 = scalar_lea.hbm %s995_s4, 256 }
 0x1a7   : > { %p696_p11 = scmp.ne.s32.totalorder %s954_s20, %s695_s10  ;;  %p700_p0 = scmp.lt.s32.totalorder %s954_s20, %s995_s4 }
 0x1a8   : > { %p701_p1 = scmp.lt.s32.totalorder %s699_s26, %s695_s10 }
 0x1a9   : > { %p697_p6 = pnand %p696_p11, %p1011_p2 }
 0x1aa   : > { %p702_p12 = por %p701_p1, %p700_p0 }
 0x1ab   : > { %p698_p4 = pneg %p697_p6 }
 0x1ad   : > { %p703_p13 = pnand %p702_p12, %p698_p4 }
 0x1af   : > { %706 = shalt.err (!%p703_p13)
}
 0x1b0   : > { %554 = dma.vmem_to_hbm [thread:$0]  (%p1011_p2), %s417_s6, 128, %s954_s20, %s403_s22  }
 0x1b1 PF: > { %s428_s25 = sand.u32 1, %s737_s15   ;;  %p1012_p3 = scmp.ne.s32.totalorder %s1003_s28, 0 }
 0x1b2   : > { %p1013_p7 = scmp.ge.s32.totalorder %s749_s18, 2  ;;  %s429_s7 = scalar_lea.sflag [#allocation4], %s428_s25 }
 0x1b4   : > { %p565_p8 = pnand %p1013_p7, %p1012_p3 }
 0x1b6   : > { %p566_p9 = pneg %p565_p8 }
 0x1b8   : > { %732 = dma.done.wait (%p566_p9), %s429_s7, 128  }
 0x1b9   : > { %734 = vsyncadd (%p566_p9), %s429_s7, 4294967168  ;;  %p18_p10 = scmp.ge.s32.totalorder %s817_s21, 4   ;;  %s1014_s15 = smov %s741_s16 }
 0x1ba   : > { %s1015_s16 = smov %s745_s17  ;;  %s1016_s17 = smov %s829_s24 }
 0x1bb   : > { %s1017_s18 = smov %s817_s21  ;;  %20 = sbr.rel (!%p18_p10) target bundleno = 6 (0x6), region = 95 }
 0x1c0   :  { %434 = vsyncpa [#allocation3], 1 }
 0x1c1   :  { %436 = vsyncpa [#allocation3 + $0x1], 1 }
 0x1c2   :  { %437 = vsyncpa [#allocation6], 1 }
 0x1c3   :  { %438 = vsyncpa [#allocation4], 1 }
 0x1c4   :  { %440 = vsyncpa [#allocation4 + $0x1], 1 }

</bundles_post_ra>
